<compile_context>
chip_gen: v6e
topology: v6e:2x2x1
jax: 0.10.0
libtpu: 0.0.40
codegen_flags: <defaults>
</compile_context>

<pallas_src>
import functools

import jax
import jax.numpy as jnp
from jax.experimental import pallas as pl
from jax.experimental.pallas import tpu as pltpu

EPS = 0.003
LEAKY_SLOPE = 0.01   # torch.nn.LeakyReLU default
_LANE = 128
# Conservative VMEM bytes per block row: input x2 buffers, output x2, ~3 live
# (rows, 128) f32 intermediates, all lane-padded to 128.
_BYTES_PER_BLOCK_ROW = 4 * _LANE * 7


def _round_up(x, m):
    return ((x + m - 1) // m) * m


def _leaky_relu(v):
    return jnp.where(v > 0, v, LEAKY_SLOPE * v)


def actor_kernel(x_ref, w1_ref, w2_ref, w3_ref, w4_ref,
                 b1_ref, b2_ref, b3_ref, b4_ref, o_ref, *, out_cols):
    """fc1..fc4 (+ LeakyReLU x3, tanh) on one folded batch tile.

    x_ref : (rows, L_in)     F packed states per row (L_in = F*state_dim)
    wK_ref: (*, >=128)       block-diagonal, zero-padded weight planes
    bK_ref: (1, >=128)       F-tiled, zero-padded biases
    o_ref : (rows, out_cols) out_cols = F*action_dim
    Zero-padded rows/lanes are inert (LeakyReLU(0)=0), so every intermediate is
    exact in its leading lanes; no sub-(8,128) ref slices are needed.
    """
    f32 = jnp.float32
    x = x_ref[...]
    h = _leaky_relu(jnp.dot(x, w1_ref[...], preferred_element_type=f32) + b1_ref[...])
    h = _leaky_relu(jnp.dot(h, w2_ref[...], preferred_element_type=f32) + b2_ref[...])
    h = _leaky_relu(jnp.dot(h, w3_ref[...], preferred_element_type=f32) + b3_ref[...])
    y = jnp.dot(h, w4_ref[...], preferred_element_type=f32) + b4_ref[...]
    o_ref[...] = jnp.tanh(y[:, :out_cols]).astype(o_ref.dtype)


def _pack_weight(w, fold, rows_pad, cols_pad):
    """Block-diagonal stack of `fold` copies of w, zero-padded to (rows_pad, cols_pad)."""
    bd = jnp.kron(jnp.eye(fold, dtype=jnp.float32), w.astype(jnp.float32))
    out = jnp.zeros((rows_pad, cols_pad), jnp.float32)
    return out.at[:bd.shape[0], :bd.shape[1]].set(bd)


def _pack_bias(b, fold, cols_pad):
    t = jnp.tile(jnp.reshape(b, (1, -1)).astype(jnp.float32), (1, fold))
    out = jnp.zeros((1, cols_pad), jnp.float32)
    return out.at[:, :t.shape[1]].set(t)


def _vmem_budget_bytes():
    try:
        phys = int(pltpu.get_tpu_info().vmem_capacity_bytes)
    except Exception:
        phys = 64 << 20                      # v7x-safe assumption if query unavailable
    return int(min(phys // 2, 48 << 20))     # ample headroom for the compiler


def _pick_rows(total_rows, lane_in, vmem_budget, requested=None):
    """Block rows per grid step: >= ~1.5 MiB of input per step, bounded by the VMEM
    budget; small grids are rounded to an even step count (v7x has 2 TensorCores)."""
    if requested is not None:
        rows = max(8, (int(requested) // 8) * 8)
    else:
        target = (3 << 20) // 2 // max(4 * lane_in, 1)   # ~1.5 MiB of input per step
        cap = max(8, vmem_budget // _BYTES_PER_BLOCK_ROW)
        rows = max(512, min(target, cap))
        rows = max(8, (rows // 8) * 8)
    if rows >= total_rows:
        return total_rows                                 # single full-array block
    steps = pl.cdiv(total_rows, rows)
    if requested is None and 2 <= steps <= 8 and steps % 2:
        steps += 1                                        # even grid for v7x's 2 TCs
        rows = max(8, _round_up(pl.cdiv(total_rows, steps), 8))
        if rows >= total_rows:
            return total_rows
    return rows


@functools.partial(jax.jit, static_argnames=("fold", "rows", "vmem_limit"))
def _actor_forward_impl(state, params, *, fold, rows, vmem_limit):
    n, state_dim = state.shape
    w1, b1, w2, b2, w3, b3, w4, b4 = params
    action_dim = w4.shape[1]

    l_in = fold * state_dim
    l_out = fold * action_dim
    h1 = _round_up(max(fold * 8, _LANE), _LANE)
    h2 = _round_up(max(fold * 4, _LANE), _LANE)
    h3 = _round_up(max(fold * 2, _LANE), _LANE)
    h4 = _round_up(max(l_out, _LANE), _LANE)

    # Fold F consecutive states into one lane-dense row (free reshape for contiguous
    # f32).  Only a <= fold-1 row pad is ever added; raggedness w.r.t. the batch tile
    # is handled by Pallas' masked boundary block, not by jnp.pad.
    n_fold = _round_up(n, fold)
    x2d = state if n_fold == n else jnp.pad(state, ((0, n_fold - n), (0, 0)))
    r_total = n_fold // fold
    x_dense = x2d.reshape(r_total, l_in)

    # Block-diagonal (fold copies), zero-padded weight planes + tiled biases.
    w1p = _pack_weight(w1, fold, l_in, h1)
    w2p = _pack_weight(w2, fold, h1, h2)
    w3p = _pack_weight(w3, fold, h2, h3)
    w4p = _pack_weight(w4, fold, h3, h4)
    b1p = _pack_bias(b1, fold, h1)
    b2p = _pack_bias(b2, fold, h2)
    b3p = _pack_bias(b3, fold, h3)
    b4p = _pack_bias(b4, fold, h4)

    kernel = functools.partial(actor_kernel, out_cols=l_out)

    def full(a):  # resident operand: constant index map -> fetched once
        return pl.BlockSpec(a.shape, lambda i: (0, 0))

    cost = pl.CostEstimate(
        flops=2 * n_fold * (state_dim * 8 + 8 * 4 + 4 * 2 + 2 * action_dim),
        transcendentals=n_fold * action_dim,  # tanh
        bytes_accessed=4 * (n_fold * (state_dim + action_dim)
                            + w1p.size + w2p.size + w3p.size + w4p.size
                            + b1p.size + b2p.size + b3p.size + b4p.size),
    )

    out = pl.pallas_call(
        kernel,
        out_shape=jax.ShapeDtypeStruct((r_total, l_out), jnp.float32),
        grid=(pl.cdiv(r_total, rows),),
        in_specs=[pl.BlockSpec((rows, l_in), lambda i: (i, 0)),
                  full(w1p), full(w2p), full(w3p), full(w4p),
                  full(b1p), full(b2p), full(b3p), full(b4p)],
        out_specs=pl.BlockSpec((rows, l_out), lambda i: (i, 0)),
        compiler_params=pltpu.CompilerParams(
            dimension_semantics=("parallel",),
            vmem_limit_bytes=vmem_limit),
        cost_estimate=cost,
    )(x_dense, w1p, w2p, w3p, w4p, b1p, b2p, b3p, b4p)

    act = out.reshape(n_fold, action_dim)   # free view: folded rows are contiguous
    return act if n_fold == n else act[:n]


def actor_forward(state, params, rows_per_step=None):
    """state: [N, state_dim] (or [state_dim]) f32 -> tanh-squashed action [N, action_dim]."""
    squeeze = state.ndim == 1
    if squeeze:
        state = state[None, :]
    n, state_dim = state.shape
    fold = _LANE // state_dim if (_LANE % state_dim == 0) else 1  # fold=1 fallback
    r_total = _round_up(n, fold) // fold
    vmem_budget = _vmem_budget_bytes()
    rows = _pick_rows(r_total, fold * state_dim, vmem_budget, rows_per_step)
    out = _actor_forward_impl(state, tuple(params), fold=fold, rows=rows,
                              vmem_limit=vmem_budget)
    return out[0] if squeeze else out


def init_actor_params(key, state_dim, action_dim):
    """Mirrors the PyTorch module's shapes / init style (fc4 weight uniform(-EPS, EPS),
    fc4 bias keeps the default Linear init, exactly as in the reference)."""
    ks = jax.random.split(key, 8)

    def linear_init(kw, kb, fan_in, fan_out):
        bound = 1.0 / jnp.sqrt(jnp.float32(fan_in))
        w = jax.random.uniform(kw, (fan_in, fan_out), jnp.float32, -bound, bound)
        b = jax.random.uniform(kb, (1, fan_out), jnp.float32, -bound, bound)
        return w, b

    w1, b1 = linear_init(ks[0], ks[1], state_dim, 8)
    w2, b2 = linear_init(ks[2], ks[3], 8, 4)
    w3, b3 = linear_init(ks[4], ks[5], 4, 2)
    w4 = jax.random.uniform(ks[6], (2, action_dim), jnp.float32, -EPS, EPS)
    b4 = jax.random.uniform(ks[7], (1, action_dim), jnp.float32,
                            -1.0 / jnp.sqrt(2.0), 1.0 / jnp.sqrt(2.0))
    return (w1, b1, w2, b2, w3, b3, w4, b4)


def actor_forward_ref(state, params):
    """Pure-JAX reference for correctness checks."""
    w1, b1, w2, b2, w3, b3, w4, b4 = params
    h = _leaky_relu(state @ w1 + b1)
    h = _leaky_relu(h @ w2 + b2)
    h = _leaky_relu(h @ w3 + b3)
    return jnp.tanh(h @ w4 + b4)


if __name__ == "__main__":
    key = jax.random.PRNGKey(0)
    k_param, k_state = jax.random.split(key)

    # Primary demo: small shapes consistent with the module (batch=2, state_dim=16).
    batch, state_dim, action_dim = 2, 16, 4
    params = init_actor_params(k_param, state_dim, action_dim)
    state = jax.random.normal(k_state, (batch, state_dim), jnp.float32)

    action = actor_forward(state, params)
    jax.block_until_ready(action)
    ref = actor_forward_ref(state, params)
    assert action.shape == (batch, action_dim)
    assert jnp.allclose(action, ref, atol=1e-4, rtol=1e-4)

    # Multi-step tiled path: ragged grid (boundary block masked) + different tilings
    # must agree with each other (identical per-row math) and with the reference.
    big_state = jax.random.normal(jax.random.fold_in(k_state, 1),
                                  (1000, state_dim), jnp.float32)
    big_ref = actor_forward_ref(big_state, params)
    big_def = actor_forward(big_state, params)                     # single block (125 folded rows)
    big_r32 = actor_forward(big_state, params, rows_per_step=32)   # grid=(4,), masked tail
    big_r64 = actor_forward(big_state, params, rows_per_step=64)   # grid=(2,), masked tail
    jax.block_until_ready((big_def, big_r32, big_r64))
    assert big_def.shape == (1000, action_dim)
    assert jnp.allclose(big_def, big_r32, atol=1e-5, rtol=1e-5)
    assert jnp.allclose(big_def, big_r64, atol=1e-5, rtol=1e-5)
    assert jnp.allclose(big_def, big_ref, atol=2e-3, rtol=2e-3)

    # Batch not a multiple of the fold factor (N % 8 != 0) -> tiny tail-pad path.
    odd_state = jax.random.normal(jax.random.fold_in(k_state, 2), (77, state_dim), jnp.float32)
    odd = actor_forward(odd_state, params)
    jax.block_until_ready(odd)
    assert jnp.allclose(odd, actor_forward_ref(odd_state, params), atol=2e-3, rtol=2e-3)

    # state_dim that does not divide 128 exercises the fold=1 (row-per-row) fallback.
    params24 = init_actor_params(jax.random.fold_in(k_param, 3), 24, 3)
    st24 = jax.random.normal(jax.random.fold_in(k_state, 3), (64, 24), jnp.float32)
    a24 = actor_forward(st24, params24)
    jax.block_until_ready(a24)
    assert a24.shape == (64, 3)
    assert jnp.allclose(a24, actor_forward_ref(st24, params24), atol=2e-3, rtol=2e-3)

    print("KERNEL_OK")
</pallas_src>

<mosaic_0001>
module attributes {stable_mosaic.version = 11 : i64} {
  func.func @actor_kernel(%arg0: i32, %arg1: memref<1x128xf32, #tpu.memory_space<vmem>>, %arg2: memref<128x128xf32, #tpu.memory_space<vmem>>, %arg3: memref<128x128xf32, #tpu.memory_space<vmem>>, %arg4: memref<128x128xf32, #tpu.memory_space<vmem>>, %arg5: memref<128x128xf32, #tpu.memory_space<vmem>>, %arg6: memref<1x128xf32, #tpu.memory_space<vmem>>, %arg7: memref<1x128xf32, #tpu.memory_space<vmem>>, %arg8: memref<1x128xf32, #tpu.memory_space<vmem>>, %arg9: memref<1x128xf32, #tpu.memory_space<vmem>>, %arg10: memref<1x32xf32, #tpu.memory_space<vmem>>) attributes {dimension_semantics = [#tpu.dimension_semantics<parallel>], iteration_bounds = array<i64: 1>, scalar_prefetch = 0 : i64, scratch_operands = 0 : i64, tpu.core_type = #tpu.core_type<tc>, window_params = [{transform_indices = @transform_0, window_bounds = array<i64: 1, 128>}, {pipeline_mode = #tpu.pipeline_mode<synchronous>, transform_indices = @transform_1, window_bounds = array<i64: 128, 128>}, {pipeline_mode = #tpu.pipeline_mode<synchronous>, transform_indices = @transform_2, window_bounds = array<i64: 128, 128>}, {pipeline_mode = #tpu.pipeline_mode<synchronous>, transform_indices = @transform_3, window_bounds = array<i64: 128, 128>}, {pipeline_mode = #tpu.pipeline_mode<synchronous>, transform_indices = @transform_4, window_bounds = array<i64: 128, 128>}, {pipeline_mode = #tpu.pipeline_mode<synchronous>, transform_indices = @transform_5, window_bounds = array<i64: 1, 128>}, {pipeline_mode = #tpu.pipeline_mode<synchronous>, transform_indices = @transform_6, window_bounds = array<i64: 1, 128>}, {pipeline_mode = #tpu.pipeline_mode<synchronous>, transform_indices = @transform_7, window_bounds = array<i64: 1, 128>}, {pipeline_mode = #tpu.pipeline_mode<synchronous>, transform_indices = @transform_8, window_bounds = array<i64: 1, 128>}, {transform_indices = @transform_9, window_bounds = array<i64: 1, 32>}]} {
    %c0 = arith.constant 0 : index
    %c0_0 = arith.constant 0 : index
    %0 = vector.load %arg1[%c0, %c0_0] : memref<1x128xf32, #tpu.memory_space<vmem>>, vector<1x128xf32>
    %c0_1 = arith.constant 0 : index
    %c0_2 = arith.constant 0 : index
    %1 = vector.load %arg2[%c0_1, %c0_2] : memref<128x128xf32, #tpu.memory_space<vmem>>, vector<128x128xf32>
    %cst = arith.constant dense<0.000000e+00> : vector<1x128xf32>
    %2 = tpu.matmul %0, %1, %cst {dimension_numbers = #tpu.dot_dimension_numbers<[1], [0], [0], [1], [0, 0, 1, 1], [], []>} : vector<1x128xf32>, vector<128x128xf32>, vector<1x128xf32> -> vector<1x128xf32>
    %c0_3 = arith.constant 0 : index
    %c0_4 = arith.constant 0 : index
    %3 = vector.load %arg6[%c0_3, %c0_4] : memref<1x128xf32, #tpu.memory_space<vmem>>, vector<1x128xf32>
    %4 = arith.addf %2, %3 : vector<1x128xf32>
    %cst_5 = arith.constant 0.000000e+00 : f32
    %5 = vector.broadcast %cst_5 : f32 to vector<1x128xf32>
    %6 = arith.cmpf ogt, %4, %5 : vector<1x128xf32>
    %cst_6 = arith.constant 0.00999999977 : f32
    %7 = vector.broadcast %cst_6 : f32 to vector<1x128xf32>
    %8 = arith.mulf %7, %4 : vector<1x128xf32>
    %9 = arith.select %6, %4, %8 : vector<1x128xi1>, vector<1x128xf32>
    %c0_7 = arith.constant 0 : index
    %c0_8 = arith.constant 0 : index
    %10 = vector.load %arg3[%c0_7, %c0_8] : memref<128x128xf32, #tpu.memory_space<vmem>>, vector<128x128xf32>
    %cst_9 = arith.constant dense<0.000000e+00> : vector<1x128xf32>
    %11 = tpu.matmul %9, %10, %cst_9 {dimension_numbers = #tpu.dot_dimension_numbers<[1], [0], [0], [1], [0, 0, 1, 1], [], []>} : vector<1x128xf32>, vector<128x128xf32>, vector<1x128xf32> -> vector<1x128xf32>
    %c0_10 = arith.constant 0 : index
    %c0_11 = arith.constant 0 : index
    %12 = vector.load %arg7[%c0_10, %c0_11] : memref<1x128xf32, #tpu.memory_space<vmem>>, vector<1x128xf32>
    %13 = arith.addf %11, %12 : vector<1x128xf32>
    %cst_12 = arith.constant 0.000000e+00 : f32
    %14 = vector.broadcast %cst_12 : f32 to vector<1x128xf32>
    %15 = arith.cmpf ogt, %13, %14 : vector<1x128xf32>
    %cst_13 = arith.constant 0.00999999977 : f32
    %16 = vector.broadcast %cst_13 : f32 to vector<1x128xf32>
    %17 = arith.mulf %16, %13 : vector<1x128xf32>
    %18 = arith.select %15, %13, %17 : vector<1x128xi1>, vector<1x128xf32>
    %c0_14 = arith.constant 0 : index
    %c0_15 = arith.constant 0 : index
    %19 = vector.load %arg4[%c0_14, %c0_15] : memref<128x128xf32, #tpu.memory_space<vmem>>, vector<128x128xf32>
    %cst_16 = arith.constant dense<0.000000e+00> : vector<1x128xf32>
    %20 = tpu.matmul %18, %19, %cst_16 {dimension_numbers = #tpu.dot_dimension_numbers<[1], [0], [0], [1], [0, 0, 1, 1], [], []>} : vector<1x128xf32>, vector<128x128xf32>, vector<1x128xf32> -> vector<1x128xf32>
    %c0_17 = arith.constant 0 : index
    %c0_18 = arith.constant 0 : index
    %21 = vector.load %arg8[%c0_17, %c0_18] : memref<1x128xf32, #tpu.memory_space<vmem>>, vector<1x128xf32>
    %22 = arith.addf %20, %21 : vector<1x128xf32>
    %cst_19 = arith.constant 0.000000e+00 : f32
    %23 = vector.broadcast %cst_19 : f32 to vector<1x128xf32>
    %24 = arith.cmpf ogt, %22, %23 : vector<1x128xf32>
    %cst_20 = arith.constant 0.00999999977 : f32
    %25 = vector.broadcast %cst_20 : f32 to vector<1x128xf32>
    %26 = arith.mulf %25, %22 : vector<1x128xf32>
    %27 = arith.select %24, %22, %26 : vector<1x128xi1>, vector<1x128xf32>
    %c0_21 = arith.constant 0 : index
    %c0_22 = arith.constant 0 : index
    %28 = vector.load %arg5[%c0_21, %c0_22] : memref<128x128xf32, #tpu.memory_space<vmem>>, vector<128x128xf32>
    %cst_23 = arith.constant dense<0.000000e+00> : vector<1x128xf32>
    %29 = tpu.matmul %27, %28, %cst_23 {dimension_numbers = #tpu.dot_dimension_numbers<[1], [0], [0], [1], [0, 0, 1, 1], [], []>} : vector<1x128xf32>, vector<128x128xf32>, vector<1x128xf32> -> vector<1x128xf32>
    %c0_24 = arith.constant 0 : index
    %c0_25 = arith.constant 0 : index
    %30 = vector.load %arg9[%c0_24, %c0_25] : memref<1x128xf32, #tpu.memory_space<vmem>>, vector<1x128xf32>
    %31 = arith.addf %29, %30 : vector<1x128xf32>
    %32 = vector.extract_strided_slice %31 {offsets = [0, 0], sizes = [1, 32], strides = [1, 1]} : vector<1x128xf32> to vector<1x32xf32>
    %33 = math.tanh %32 : vector<1x32xf32>
    %c0_26 = arith.constant 0 : index
    %c0_27 = arith.constant 0 : index
    %34 = vector.load %arg10[%c0_26, %c0_27] : memref<1x32xf32, #tpu.memory_space<vmem>>, vector<1x32xf32>
    tpu.vector_store %arg10[%c0_26, %c0_27], %33 {strides = array<i32>} : memref<1x32xf32, #tpu.memory_space<vmem>>, vector<1x32xf32>,
    return
  }
  func.func @transform_0(%arg0: i32) -> (i32, i32) {
    %c0_i32 = arith.constant 0 : i32
    %c0_i32_0 = arith.constant 0 : i32
    return %arg0, %c0_i32 : i32, i32
  }
  func.func @transform_1(%arg0: i32) -> (i32, i32) {
    %c0_i32 = arith.constant 0 : i32
    %c0_i32_0 = arith.constant 0 : i32
    %c0_i32_1 = arith.constant 0 : i32
    return %c0_i32, %c0_i32_0 : i32, i32
  }
  func.func @transform_2(%arg0: i32) -> (i32, i32) {
    %c0_i32 = arith.constant 0 : i32
    %c0_i32_0 = arith.constant 0 : i32
    %c0_i32_1 = arith.constant 0 : i32
    return %c0_i32, %c0_i32_0 : i32, i32
  }
  func.func @transform_3(%arg0: i32) -> (i32, i32) {
    %c0_i32 = arith.constant 0 : i32
    %c0_i32_0 = arith.constant 0 : i32
    %c0_i32_1 = arith.constant 0 : i32
    return %c0_i32, %c0_i32_0 : i32, i32
  }
  func.func @transform_4(%arg0: i32) -> (i32, i32) {
    %c0_i32 = arith.constant 0 : i32
    %c0_i32_0 = arith.constant 0 : i32
    %c0_i32_1 = arith.constant 0 : i32
    return %c0_i32, %c0_i32_0 : i32, i32
  }
  func.func @transform_5(%arg0: i32) -> (i32, i32) {
    %c0_i32 = arith.constant 0 : i32
    %c0_i32_0 = arith.constant 0 : i32
    %c0_i32_1 = arith.constant 0 : i32
    return %c0_i32, %c0_i32_0 : i32, i32
  }
  func.func @transform_6(%arg0: i32) -> (i32, i32) {
    %c0_i32 = arith.constant 0 : i32
    %c0_i32_0 = arith.constant 0 : i32
    %c0_i32_1 = arith.constant 0 : i32
    return %c0_i32, %c0_i32_0 : i32, i32
  }
  func.func @transform_7(%arg0: i32) -> (i32, i32) {
    %c0_i32 = arith.constant 0 : i32
    %c0_i32_0 = arith.constant 0 : i32
    %c0_i32_1 = arith.constant 0 : i32
    return %c0_i32, %c0_i32_0 : i32, i32
  }
  func.func @transform_8(%arg0: i32) -> (i32, i32) {
    %c0_i32 = arith.constant 0 : i32
    %c0_i32_0 = arith.constant 0 : i32
    %c0_i32_1 = arith.constant 0 : i32
    return %c0_i32, %c0_i32_0 : i32, i32
  }
  func.func @transform_9(%arg0: i32) -> (i32, i32) {
    %c0_i32 = arith.constant 0 : i32
    %c0_i32_0 = arith.constant 0 : i32
    return %arg0, %c0_i32 : i32, i32
  }
}

</mosaic_0001>

<bundles_post_ra>
// kernel: _actor_forward_impl.1
= control target key start
LH: loop header
LB: loop body
LE: loop exit
PB: predicated region body
PF: predicated region fallthrough
CT: control target
= control target key end

     0   :  { %v609_v0 = vmov 0.0   ;;  %vm610_vm0 = vmmov 0   ;;  %vm391_vm4 = vcmask 253952   ;;  %s943_s1 = inlined_call_operand.vmem [shape: f32[128,128], index: 1, kind: input, shape index: {}]   ;;  %s944_s2 = inlined_call_operand.vmem [shape: f32[128,128], index: 2, kind: input, shape index: {}]   ;;  %s945_s0 = inlined_call_operand.vmem [shape: f32[1,128], index: 0, kind: input, shape index: {}]   ;;  %s946_s3 = inlined_call_operand.vmem [shape: f32[128,128], index: 3, kind: input, shape index: {}]   ;;  %s947_s5 = inlined_call_operand.vmem [shape: f32[1,128], index: 5, kind: input, shape index: {}]   ;;  %s948_s4 = inlined_call_operand.vmem [shape: f32[128,128], index: 4, kind: input, shape index: {}]   ;;  %s949_s6 = inlined_call_operand.vmem [shape: f32[1,128], index: 6, kind: input, shape index: {}]   ;;  %s950_s7 = inlined_call_operand.vmem [shape: f32[1,128], index: 7, kind: input, shape index: {}]   ;;  %s951_s8 = inlined_call_operand.vmem [shape: f32[1,128], index: 8, kind: input, shape index: {}]   ;;  %s952_s9 = inlined_call_operand.vmem [shape: f32[1,32], index: 9, kind: output, shape index: {}]  }
   0x1   :  { %465 = vmatprep.subr.mxu0 %v609_v0  ;;  %v48_v1 = vld [vmem:[%s943_s1 + $0x78] sm:$0xff]  ;;  %v47_v2 = vld [vmem:[%s943_s1 + $0x70] sm:$0xff]  ;;  %497 = vmatprep.mubr.msk.f32.mxu0 %vm610_vm0, %v609_v0  ;;  %v46_v3 = vld [vmem:[%s943_s1 + $0x68] sm:$0xff] }
   0x2   :  { %466 = vmatpush3.msra.mxu0 %v48_v1  ;;  %500 = vmatprep.subr.mxu1 %v609_v0  ;;  %v45_v4 = vld [vmem:[%s943_s1 + $0x60] sm:$0xff]  ;;  %v138_v5 = vld [vmem:[%s944_s2 + $0x78] sm:$0xff]  ;;  %v137_v7 = vld [vmem:[%s944_s2 + $0x70] sm:$0xff] }
   0x3   :  { %467 = vmatprep.subr.mxu0 %v609_v0  ;;  %532 = vmatprep.mubr.msk.f32.mxu1 %vm610_vm0, %v609_v0  ;;  %v44_v6 = vld [vmem:[%s943_s1 + $0x58] sm:$0xff]  ;;  %v136_v8 = vld [vmem:[%s944_s2 + $0x68] sm:$0xff]  ;;  %v43_v9 = vld [vmem:[%s943_s1 + $0x50] sm:$0xff] }
   0x4   :  { %468 = vmatpush3.msra.mxu0 %v47_v2  ;;  %501 = vmatpush3.msra.mxu1 %v138_v5  ;;  %v135_v10 = vld [vmem:[%s944_s2 + $0x60] sm:$0xff]  ;;  %v42_v11 = vld [vmem:[%s943_s1 + $0x48] sm:$0xff]  ;;  %v134_v12 = vld [vmem:[%s944_s2 + $0x58] sm:$0xff] }
   0x5   :  { %469 = vmatprep.subr.mxu0 %v609_v0  ;;  %502 = vmatprep.subr.mxu1 %v609_v0  ;;  %v41_v13 = vld [vmem:[%s943_s1 + $0x40] sm:$0xff]  ;;  %v133_v14 = vld [vmem:[%s944_s2 + $0x50] sm:$0xff]  ;;  %v40_v15 = vld [vmem:[%s943_s1 + $0x38] sm:$0xff] }
   0x6   :  { %470 = vmatpush3.msra.mxu0 %v46_v3  ;;  %503 = vmatpush3.msra.mxu1 %v137_v7  ;;  %v132_v16 = vld [vmem:[%s944_s2 + $0x48] sm:$0xff]  ;;  %v39_v17 = vld [vmem:[%s943_s1 + $0x30] sm:$0xff]  ;;  %v131_v18 = vld [vmem:[%s944_s2 + $0x40] sm:$0xff] }
   0x7   :  { %471 = vmatprep.subr.mxu0 %v609_v0  ;;  %504 = vmatprep.subr.mxu1 %v609_v0  ;;  %v38_v19 = vld [vmem:[%s943_s1 + $0x28] sm:$0xff]  ;;  %v130_v20 = vld [vmem:[%s944_s2 + $0x38] sm:$0xff]  ;;  %v37_v21 = vld [vmem:[%s943_s1 + $0x20] sm:$0xff] }
   0x8   :  { %472 = vmatpush3.msra.mxu0 %v45_v4  ;;  %505 = vmatpush3.msra.mxu1 %v136_v8  ;;  %v129_v22 = vld [vmem:[%s944_s2 + $0x30] sm:$0xff]  ;;  %v36_v23 = vld [vmem:[%s943_s1 + $0x18] sm:$0xff]  ;;  %v128_v24 = vld [vmem:[%s944_s2 + $0x28] sm:$0xff] }
   0x9   :  { %473 = vmatprep.subr.mxu0 %v609_v0  ;;  %506 = vmatprep.subr.mxu1 %v609_v0  ;;  %v35_v25 = vld [vmem:[%s943_s1 + $0x10] sm:$0xff]  ;;  %v127_v26 = vld [vmem:[%s944_s2 + $0x20] sm:$0xff]  ;;  %v34_v27 = vld [vmem:[%s943_s1 + $0x8] sm:$0xff] }
   0xa   :  { %474 = vmatpush3.msra.mxu0 %v44_v6  ;;  %507 = vmatpush3.msra.mxu1 %v135_v10  ;;  %v126_v28 = vld [vmem:[%s944_s2 + $0x18] sm:$0xff]  ;;  %v33_v29 = vld [vmem:[%s943_s1] sm:$0xff]  ;;  %v125_v31 = vld [vmem:[%s944_s2 + $0x10] sm:$0xff] }
   0xb   :  { %475 = vmatprep.subr.mxu0 %v609_v0  ;;  %508 = vmatprep.subr.mxu1 %v609_v0  ;;  %v32_v30 = vld [vmem:[%s945_s0] sm:$0x1]  ;;  %v124_v32 = vld [vmem:[%s944_s2 + $0x8] sm:$0xff]  ;;  %v228_v34 = vld [vmem:[%s946_s3 + $0x78] sm:$0xff] }
   0xc   :  { %476 = vmatpush3.msra.mxu0 %v43_v9  ;;  %509 = vmatpush3.msra.mxu1 %v134_v12  ;;  %v123_v33 = vld [vmem:[%s944_s2] sm:$0xff]  ;;  %v227_v35 = vld [vmem:[%s946_s3 + $0x70] sm:$0xff]  ;;  %v226_v36 = vld [vmem:[%s946_s3 + $0x68] sm:$0xff] }
   0xd   :  { %477 = vmatprep.subr.mxu0 %v609_v0  ;;  %510 = vmatprep.subr.mxu1 %v609_v0  ;;  %v225_v37 = vld [vmem:[%s946_s3 + $0x60] sm:$0xff]  ;;  %v224_v38 = vld [vmem:[%s946_s3 + $0x58] sm:$0xff]  ;;  %v223_v39 = vld [vmem:[%s946_s3 + $0x50] sm:$0xff] }
   0xe   :  { %478 = vmatpush3.msra.mxu0 %v42_v11  ;;  %511 = vmatpush3.msra.mxu1 %v133_v14  ;;  %v222_v40 = vld [vmem:[%s946_s3 + $0x48] sm:$0xff]  ;;  %v221_v41 = vld [vmem:[%s946_s3 + $0x40] sm:$0xff]  ;;  %v220_v42 = vld [vmem:[%s946_s3 + $0x38] sm:$0xff] }
   0xf   :  { %479 = vmatprep.subr.mxu0 %v609_v0  ;;  %512 = vmatprep.subr.mxu1 %v609_v0  ;;  %v219_v43 = vld [vmem:[%s946_s3 + $0x30] sm:$0xff]  ;;  %v218_v44 = vld [vmem:[%s946_s3 + $0x28] sm:$0xff]  ;;  %v217_v45 = vld [vmem:[%s946_s3 + $0x20] sm:$0xff] }
  0x10   :  { %480 = vmatpush3.msra.mxu0 %v41_v13  ;;  %513 = vmatpush3.msra.mxu1 %v132_v16  ;;  %v216_v46 = vld [vmem:[%s946_s3 + $0x18] sm:$0xff]  ;;  %v49_v47 = vld [vmem:[%s947_s5] sm:$0x1]  ;;  %v215_v53 = vld [vmem:[%s946_s3 + $0x10] sm:$0xff] }
  0x11   :  { %481 = vmatprep.subr.mxu0 %v609_v0  ;;  %514 = vmatprep.subr.mxu1 %v609_v0  ;;  %v214_v54 = vld [vmem:[%s946_s3 + $0x8] sm:$0xff]  ;;  %v213_v55 = vld [vmem:[%s946_s3] sm:$0xff]  ;;  %v318_v56 = vld [vmem:[%s948_s4 + $0x78] sm:$0xff] }
  0x12   :  { %482 = vmatpush3.msra.mxu0 %v40_v15  ;;  %515 = vmatpush3.msra.mxu1 %v131_v18  ;;  %v317_v57 = vld [vmem:[%s948_s4 + $0x70] sm:$0xff]  ;;  %v316_v58 = vld [vmem:[%s948_s4 + $0x68] sm:$0xff]  ;;  %v315_v59 = vld [vmem:[%s948_s4 + $0x60] sm:$0xff] }
  0x13   :  { %483 = vmatprep.subr.mxu0 %v609_v0  ;;  %516 = vmatprep.subr.mxu1 %v609_v0  ;;  %v314_v60 = vld [vmem:[%s948_s4 + $0x58] sm:$0xff]  ;;  %v313_v61 = vld [vmem:[%s948_s4 + $0x50] sm:$0xff]  ;;  %v312_v62 = vld [vmem:[%s948_s4 + $0x48] sm:$0xff] }
  0x14   :  { %484 = vmatpush3.msra.mxu0 %v39_v17  ;;  %517 = vmatpush3.msra.mxu1 %v130_v20  ;;  %v311_v63 = vld [vmem:[%s948_s4 + $0x40] sm:$0xff]  ;;  %v310_v1 = vld [vmem:[%s948_s4 + $0x38] sm:$0xff]  ;;  %v309_v2 = vld [vmem:[%s948_s4 + $0x30] sm:$0xff] }
  0x15   :  { %485 = vmatprep.subr.mxu0 %v609_v0  ;;  %518 = vmatprep.subr.mxu1 %v609_v0  ;;  %v308_v3 = vld [vmem:[%s948_s4 + $0x28] sm:$0xff]  ;;  %v307_v4 = vld [vmem:[%s948_s4 + $0x20] sm:$0xff]  ;;  %v306_v5 = vld [vmem:[%s948_s4 + $0x18] sm:$0xff] }
  0x16   :  { %486 = vmatpush3.msra.mxu0 %v38_v19  ;;  %519 = vmatpush3.msra.mxu1 %v129_v22  ;;  %v139_v6 = vld [vmem:[%s949_s6] sm:$0x1]  ;;  %v305_v12 = vld [vmem:[%s948_s4 + $0x10] sm:$0xff]  ;;  %v304_v13 = vld [vmem:[%s948_s4 + $0x8] sm:$0xff] }
  0x17   :  { %487 = vmatprep.subr.mxu0 %v609_v0  ;;  %520 = vmatprep.subr.mxu1 %v609_v0  ;;  %v303_v14 = vld [vmem:[%s948_s4] sm:$0xff] }
  0x18   :  { %488 = vmatpush3.msra.mxu0 %v37_v21  ;;  %521 = vmatpush3.msra.mxu1 %v128_v24  ;;  %v229_v15 = vld [vmem:[%s950_s7] sm:$0x1] }
  0x19   :  { %489 = vmatprep.subr.mxu0 %v609_v0  ;;  %522 = vmatprep.subr.mxu1 %v609_v0  ;;  %v319_v21 = vld [vmem:[%s951_s8] sm:$0x1] }
  0x1a   :  { %490 = vmatpush3.msra.mxu0 %v36_v23  ;;  %523 = vmatpush3.msra.mxu1 %v127_v26 }
  0x1b   :  { %491 = vmatprep.subr.mxu0 %v609_v0  ;;  %524 = vmatprep.subr.mxu1 %v609_v0 }
  0x1c   :  { %492 = vmatpush3.msra.mxu0 %v35_v25  ;;  %525 = vmatpush3.msra.mxu1 %v126_v28 }
  0x1d   :  { %493 = vmatprep.subr.mxu0 %v609_v0  ;;  %526 = vmatprep.subr.mxu1 %v609_v0 }
  0x1e   :  { %494 = vmatpush3.msra.mxu0 %v34_v27  ;;  %527 = vmatpush3.msra.mxu1 %v125_v31 }
  0x1f   :  { %495 = vmatprep.subr.mxu0 %v609_v0  ;;  %528 = vmatprep.subr.mxu1 %v609_v0 }
  0x20   :  { %496 = vmatpush3.msra.mxu0 %v33_v29  ;;  %529 = vmatpush3.msra.mxu1 %v124_v32 }
  0x21   :  { %498 = vmatmul.mubr.f32.vlgmr.msra.gmra.mxu0 %v32_v30  ;;  %535 = vmatprep.subr.mxu0 %v609_v0 }
  0x22   :  { %567 = vmatprep.mubr.msk.f32.mxu0 %vm610_vm0, %v609_v0  ;;  %530 = vmatprep.subr.mxu1 %v609_v0 }
  0x23   :  { %531 = vmatpush3.msra.mxu1 %v123_v33  ;;  %536 = vmatpush3.msra.mxu0 %v228_v34 }
  0x24   :  { %570 = vmatprep.subr.mxu1 %v609_v0  ;;  %537 = vmatprep.subr.mxu0 %v609_v0 }
  0x25   :  { %538 = vmatpush3.msra.mxu0 %v227_v35 }
  0x26   :  { %539 = vmatprep.subr.mxu0 %v609_v0 }
  0x27   :  { %540 = vmatpush3.msra.mxu0 %v226_v36 }
  0x28   :  { %541 = vmatprep.subr.mxu0 %v609_v0 }
  0x29   :  { %542 = vmatpush3.msra.mxu0 %v225_v37 }
  0x2a   :  { %543 = vmatprep.subr.mxu0 %v609_v0 }
  0x2b   :  { %544 = vmatpush3.msra.mxu0 %v224_v38 }
  0x2c   :  { %545 = vmatprep.subr.mxu0 %v609_v0 }
  0x2d   :  { %546 = vmatpush3.msra.mxu0 %v223_v39 }
  0x2e   :  { %547 = vmatprep.subr.mxu0 %v609_v0 }
  0x2f   :  { %548 = vmatpush3.msra.mxu0 %v222_v40 }
  0x30   :  { %549 = vmatprep.subr.mxu0 %v609_v0 }
  0x31   :  { %550 = vmatpush3.msra.mxu0 %v221_v41 }
  0x32   :  { %551 = vmatprep.subr.mxu0 %v609_v0 }
  0x33   :  { %552 = vmatpush3.msra.mxu0 %v220_v42 }
  0x34   :  { %553 = vmatprep.subr.mxu0 %v609_v0 }
  0x35   :  { %554 = vmatpush3.msra.mxu0 %v219_v43 }
  0x36   :  { %555 = vmatprep.subr.mxu0 %v609_v0 }
  0x37   :  { %556 = vmatpush3.msra.mxu0 %v218_v44 }
  0x38   :  { %557 = vmatprep.subr.mxu0 %v609_v0 }
  0x39   :  { %558 = vmatpush3.msra.mxu0 %v217_v45 }
  0x3a   :  { %559 = vmatprep.subr.mxu0 %v609_v0 }
  0x3b   :  { %560 = vmatpush3.msra.mxu0 %v216_v46 }
  0x3c   :  { %561 = vmatprep.subr.mxu0 %v609_v0 }
  0x3d   :  { %562 = vmatpush3.msra.mxu0 %v215_v53 }
  0x3e   :  { %563 = vmatprep.subr.mxu0 %v609_v0 }
  0x3f   :  { %564 = vmatpush3.msra.mxu0 %v214_v54 }
  0x40   :  { %565 = vmatprep.subr.mxu0 %v609_v0 }
  0x41   :  { %566 = vmatpush3.msra.mxu0 %v213_v55 }
  0xe1   :  { %v116_v48 = vpop.f32.mrf.mxu0 }
  0xe2   :  { %v117_v49 = vadd.f32 %v116_v48, %v49_v47 }
  0xe3   :  { %v499_v50 = vpop.f32.mrf.mxu0 }
  0xe4   :  { %v121_v51 = vmul.f32 0.01, %v117_v49  ;;  %vm120_vm1 = vcmp.gt.f32.partialorder %v117_v49, 0.0 }
  0xe6   :  { %v122_v52 = vsel %vm120_vm1, %v117_v49, %v121_v51 }
  0xe7   :  { %533 = vmatmul.mubr.f32.vlgmr.msra.gmra.mxu1 %v122_v52 }
  0xe8   :  { %602 = vmatprep.mubr.msk.f32.mxu1 %vm610_vm0, %v609_v0  ;;  %571 = vmatpush3.msra.mxu1 %v318_v56 }
  0xe9   :  { %572 = vmatprep.subr.mxu1 %v609_v0 }
  0xea   :  { %573 = vmatpush3.msra.mxu1 %v317_v57 }
  0xeb   :  { %574 = vmatprep.subr.mxu1 %v609_v0 }
  0xec   :  { %575 = vmatpush3.msra.mxu1 %v316_v58 }
  0xed   :  { %576 = vmatprep.subr.mxu1 %v609_v0 }
  0xee   :  { %577 = vmatpush3.msra.mxu1 %v315_v59 }
  0xef   :  { %578 = vmatprep.subr.mxu1 %v609_v0 }
  0xf0   :  { %579 = vmatpush3.msra.mxu1 %v314_v60 }
  0xf1   :  { %580 = vmatprep.subr.mxu1 %v609_v0 }
  0xf2   :  { %581 = vmatpush3.msra.mxu1 %v313_v61 }
  0xf3   :  { %582 = vmatprep.subr.mxu1 %v609_v0 }
  0xf4   :  { %583 = vmatpush3.msra.mxu1 %v312_v62 }
  0xf5   :  { %584 = vmatprep.subr.mxu1 %v609_v0 }
  0xf6   :  { %585 = vmatpush3.msra.mxu1 %v311_v63 }
  0xf7   :  { %586 = vmatprep.subr.mxu1 %v609_v0 }
  0xf8   :  { %587 = vmatpush3.msra.mxu1 %v310_v1 }
  0xf9   :  { %588 = vmatprep.subr.mxu1 %v609_v0 }
  0xfa   :  { %589 = vmatpush3.msra.mxu1 %v309_v2 }
  0xfb   :  { %590 = vmatprep.subr.mxu1 %v609_v0 }
  0xfc   :  { %591 = vmatpush3.msra.mxu1 %v308_v3 }
  0xfd   :  { %592 = vmatprep.subr.mxu1 %v609_v0 }
  0xfe   :  { %593 = vmatpush3.msra.mxu1 %v307_v4 }
  0xff   :  { %594 = vmatprep.subr.mxu1 %v609_v0 }
 0x100   :  { %595 = vmatpush3.msra.mxu1 %v306_v5 }
 0x101   :  { %596 = vmatprep.subr.mxu1 %v609_v0 }
 0x102   :  { %597 = vmatpush3.msra.mxu1 %v305_v12 }
 0x103   :  { %598 = vmatprep.subr.mxu1 %v609_v0 }
 0x104   :  { %599 = vmatpush3.msra.mxu1 %v304_v13 }
 0x105   :  { %600 = vmatprep.subr.mxu1 %v609_v0 }
 0x106   :  { %601 = vmatpush3.msra.mxu1 %v303_v14 }
 0x1a7   :  { %v206_v7 = vpop.f32.mrf.mxu1 }
 0x1a8   :  { %v207_v8 = vadd.f32 %v206_v7, %v139_v6 }
 0x1a9   :  { %v534_v9 = vpop.f32.mrf.mxu1 }
 0x1aa   :  { %vm210_vm2 = vcmp.gt.f32.partialorder %v207_v8, 0.0  ;;  %v211_v10 = vmul.f32 0.01, %v207_v8 }
 0x1ac   :  { %v212_v11 = vsel %vm210_vm2, %v207_v8, %v211_v10 }
 0x1ad   :  { %568 = vmatmul.mubr.f32.vlgmr.msra.gmra.mxu0 %v212_v11 }
 0x26d   :  { %v296_v16 = vpop.f32.mrf.mxu0 }
 0x26e   :  { %v297_v17 = vadd.f32 %v296_v16, %v229_v15 }
 0x26f   :  { %v569_v18 = vpop.f32.mrf.mxu0 }
 0x270   :  { %vm300_vm3 = vcmp.gt.f32.partialorder %v297_v17, 0.0  ;;  %v301_v19 = vmul.f32 0.01, %v297_v17 }
 0x272   :  { %v302_v20 = vsel %vm300_vm3, %v297_v17, %v301_v19 }
 0x273   :  { %603 = vmatmul.mubr.f32.vlgmr.msra.gmra.mxu1 %v302_v20 }
 0x333   :  { %v386_v22 = vpop.f32.mrf.mxu1 }
 0x334   :  { %v387_v23 = vadd.f32 %v386_v22, %v319_v21 }
 0x335   :  { %v604_v24 = vpop.f32.mrf.mxu1 }
 0x336   :  { %607 = vtanh.f32 %v387_v23 }
 0x343   :  { %v608_v0 = vpop.eup %607 }
 0x344   :  { %392 = vst.msk [vmem:[%s952_s9] sm:$0x1] %vm391_vm4, %v608_v0 }

</bundles_post_ra>
